<compile_context>
chip_gen: v7x
topology: tpu7x:2x2x1
jax: 0.10.0
libtpu: 0.0.40
codegen_flags: <defaults>
</compile_context>

<pallas_src>
import math

import jax
import jax.numpy as jnp
from jax import lax
from jax.experimental import pallas as pl
from jax.experimental.pallas import tpu as pltpu

NEG_SLOPE = 0.01  # nn.LeakyReLU() default

# dtype of every matmul operand inside the kernel (accumulation is always
# f32).  bf16 ~3x faster on the MXU; set jnp.float32 for the near-exact path.
COMPUTE_DTYPE = jnp.bfloat16


def _round_up(v, m):
    return ((v + m - 1) // m) * m


def _leaky_relu(v):
    return jnp.where(v >= 0, v, NEG_SLOPE * v)


def _gnn_layer3_kernel(
    xmsg_ref,   # (2*N_pad, out_pad)  cd   resident: [x@W_hu ; x@W_hw]
    we_ref,     # (edge_pad, out_pad) cd   resident
    wattr_ref,  # (out_pad, eo_pad)   cd   resident
    e_ref,      # (TE, edge_pad)      cd   streamed edge-attr tile
    gidx_ref,   # (TE, 2)             i32  streamed: [src | tgt + n_pad]
    tgt_ref,    # (1, TE)             i32  streamed, lane-dense (for scatter)
    attr_ref,   # out (TE, eo_pad)    f32  streamed
    agg_ref,    # out (N_pad, out_pad) f32 resident per core group (scatter sums)
    cnt_ref,    # out (N_pad, 1)      f32  resident per core group (edge counts)
):
    i = pl.program_id(1)

    @pl.when(i == 0)
    def _init():
        agg_ref[...] = jnp.zeros_like(agg_ref)
        cnt_ref[...] = jnp.zeros_like(cnt_ref)

    cd = xmsg_ref.dtype
    te = e_ref.shape[0]
    two_n_pad = xmsg_ref.shape[0]
    n_pad = two_n_pad // 2

    # ---- fused gather: x@W_hu[src] + x@W_hw[tgt] in ONE incidence matmul ----
    # (edge-major one-hot so the dot is standard (TE,2N)@(2N,out): no transpose)
    g = gidx_ref[...]                                              # (TE, 2)
    lane = lax.broadcasted_iota(jnp.int32, (te, two_n_pad), 1)
    oh_gather = jnp.logical_or(lane == g[:, 0:1], lane == g[:, 1:2]).astype(cd)
    h_gather = jnp.dot(oh_gather, xmsg_ref[...],
                       preferred_element_type=jnp.float32)         # (TE, out_pad)

    e_proj = jnp.dot(e_ref[...], we_ref[...],
                     preferred_element_type=jnp.float32)           # (TE, out_pad)

    messages = _leaky_relu(h_gather + e_proj)                      # f32
    msg_c = messages.astype(cd)

    # attributes = lin_attr(messages); lane-dense streamed store
    attr_ref[...] = jnp.dot(msg_c, wattr_ref[...],
                            preferred_element_type=jnp.float32)

    # ---- scatter-sum onto target nodes + edge counts ------------------------
    # (node-major one-hot so the dot is standard (N,TE)@(TE,out))
    tgt = tgt_ref[...]                                             # (1, TE)
    node = lax.broadcasted_iota(jnp.int32, (n_pad, te), 0)
    hit_tgt = node == tgt                                          # (N_pad, TE)
    agg_ref[...] += jnp.dot(hit_tgt.astype(cd), msg_c,
                            preferred_element_type=jnp.float32)
    # counts via cross-lane reduce (XLU slot, f32 so large tiles stay exact)
    cnt_ref[...] += jnp.sum(hit_tgt.astype(jnp.float32), axis=1, keepdims=True)


def gnn_layer3_forward(x, edge_index, edge_attr, params, *, edge_tile=None,
                       compute_dtype=COMPUTE_DTYPE):
    """Pallas implementation of GNN_Layer3.forward.

    x:          [N, in_dim] float32
    edge_index: [2, E] int32
    edge_attr:  [E, edge_dim] float32
    params:     dict of linear weights in PyTorch convention [out, in].
    Returns (embeddings [N, out_dim], attributes [E, edge_out_dim]).
    """
    n, _ = x.shape
    e_cnt, edge_dim = edge_attr.shape
    out_dim = params["W_hu"].shape[0]
    eo_dim = params["lin_attr"].shape[0]

    x32 = jnp.asarray(x, jnp.float32)
    edge_attr = jnp.asarray(edge_attr, jnp.float32)

    # ---- node projections hoisted out of the kernel (fused XLA GEMMs) ------
    w_msg = jnp.concatenate([jnp.asarray(params["W_hu"], jnp.float32),
                             jnp.asarray(params["W_hw"], jnp.float32)], axis=0)
    xmsg = x32 @ w_msg.T                      # (N, 2*out) = [x@W_hu | x@W_hw]
    w_node = jnp.concatenate([jnp.asarray(params["lin_emb"], jnp.float32),
                              jnp.asarray(params["weight2"], jnp.float32)], axis=0)
    xnode = x32 @ w_node.T                    # (N, 2*out) = [x@W_emb | x@W_2]

    # ---- padded geometry ----------------------------------------------------
    n_pad = _round_up(max(n, 8), 8)
    if n_pad >= 64:
        n_pad = _round_up(n_pad, 64)          # keeps 2*n_pad lane-friendly
    edge_pad = _round_up(edge_dim, 128)
    out_pad = _round_up(out_dim, 128)         # no "+1" counts lane anymore
    eo_pad = _round_up(eo_dim, 128)
    cd_bytes = jnp.dtype(compute_dtype).itemsize

    # ---- generation-aware VMEM budget & edge tile ---------------------------
    vmem_cap = 64 * 1024 * 1024               # conservative default (v7x per-TC)
    try:
        info_fn = getattr(pltpu, "get_tpu_info", None)
        if info_fn is not None:
            vmem_cap = int(getattr(info_fn(), "vmem_capacity_bytes", vmem_cap))
    except Exception:
        pass
    if vmem_cap < 32 * 1024 * 1024:
        vmem_cap = 64 * 1024 * 1024
    if edge_tile is None:
        edge_tile = 1024 if vmem_cap >= 100 * 1024 * 1024 else 512

    te = max(8, min(int(edge_tile), _round_up(e_cnt, 8)))
    te = _round_up(te, 128) if e_cnt >= 128 else _round_up(te, 8)

    def _vmem_est(t):
        resident = 2 * (2 * n_pad * out_pad + edge_pad * out_pad
                        + out_pad * eo_pad) * cd_bytes               # inputs (x2 headroom)
        resident += 2 * (n_pad * out_pad + n_pad) * 4                # agg + cnt blocks
        streamed = 2 * (t * edge_pad * cd_bytes + 3 * t * 4 + t * eo_pad * 4)
        temps = (t * 2 * n_pad * (cd_bytes + 4)                      # gather one-hot + iota
                 + n_pad * t * (cd_bytes + 8)                        # scatter one-hot + iota/mask
                 + 4 * t * out_pad * 4)                              # message temporaries
        return resident + streamed + temps

    while te > 128 and _vmem_est(te) > int(0.7 * vmem_cap):
        te = max(128, te // 2)
    vmem_limit = int(min(max(int(1.5 * _vmem_est(te)), 32 * 1024 * 1024),
                         int(0.9 * vmem_cap)))

    num_tiles = max(1, -(-e_cnt // te))
    num_cores = 2 if num_tiles >= 2 else 1    # outer "parallel" axis -> v7x 2nd TC
    tpc = -(-num_tiles // num_cores)
    total_tiles = num_cores * tpc
    e_pad_cnt = total_tiles * te

    # ---- pad / lay out kernel operands --------------------------------------
    xmsg_p = jnp.zeros((2 * n_pad, out_pad), compute_dtype)
    xmsg_p = xmsg_p.at[:n, :out_dim].set(xmsg[:, :out_dim].astype(compute_dtype))
    xmsg_p = xmsg_p.at[n_pad:n_pad + n, :out_dim].set(
        xmsg[:, out_dim:].astype(compute_dtype))

    ep = jnp.zeros((e_pad_cnt, edge_pad), compute_dtype)
    ep = ep.at[:e_cnt, :edge_dim].set(edge_attr.astype(compute_dtype))

    src = jnp.asarray(edge_index[0], jnp.int32)
    tgt = jnp.asarray(edge_index[1], jnp.int32)
    # Padded edges carry index -1 -> match no column/row of any one-hot.
    gsrc = jnp.full((e_pad_cnt,), -1, jnp.int32).at[:e_cnt].set(src)
    gtgt = jnp.full((e_pad_cnt,), -1, jnp.int32).at[:e_cnt].set(tgt + n_pad)
    gidx = jnp.stack([gsrc, gtgt], axis=-1).reshape(total_tiles, te, 2)
    tgt_row = jnp.full((e_pad_cnt,), -1, jnp.int32).at[:e_cnt].set(tgt)
    tgt_row = tgt_row.reshape(total_tiles, 1, te)

    def _pad_wT(w, k_pad, np_):
        wt = jnp.asarray(w, jnp.float32).T          # [out,in] -> [K, N_out]
        out = jnp.zeros((k_pad, np_), jnp.float32)
        return out.at[:wt.shape[0], :wt.shape[1]].set(wt).astype(compute_dtype)

    we_p = _pad_wT(params["W_e"], edge_pad, out_pad)
    wattr_p = _pad_wT(params["lin_attr"], out_pad, eo_pad)

    flops = total_tiles * (2 * te * 2 * n_pad * out_pad     # fused gather
                           + 2 * te * edge_pad * out_pad    # edge projection
                           + 2 * te * out_pad * eo_pad      # attr projection
                           + 2 * n_pad * te * out_pad)      # scatter
    bytes_accessed = int(
        (xmsg_p.size + we_p.size + wattr_p.size + ep.size) * cd_bytes
        + (gidx.size + tgt_row.size) * 4
        + (e_pad_cnt * eo_pad + num_cores * n_pad * (out_pad + 1)) * 4)

    attr_p, agg_p, cnt_p = pl.pallas_call(
        _gnn_layer3_kernel,
        out_shape=(
            jax.ShapeDtypeStruct((e_pad_cnt, eo_pad), jnp.float32),
            jax.ShapeDtypeStruct((num_cores, n_pad, out_pad), jnp.float32),
            jax.ShapeDtypeStruct((num_cores, n_pad, 1), jnp.float32),
        ),
        grid_spec=pltpu.PrefetchScalarGridSpec(
            num_scalar_prefetch=0,
            grid=(num_cores, tpc),
            in_specs=[
                pl.BlockSpec((2 * n_pad, out_pad), lambda c, i: (0, 0)),        # xmsg (resident)
                pl.BlockSpec((edge_pad, out_pad), lambda c, i: (0, 0)),         # W_e
                pl.BlockSpec((out_pad, eo_pad), lambda c, i: (0, 0)),           # W_attr
                pl.BlockSpec((te, edge_pad), lambda c, i: (c * tpc + i, 0)),    # edge tile
                pl.BlockSpec((None, te, 2), lambda c, i: (c * tpc + i, 0, 0)),  # [src|tgt+n_pad]
                pl.BlockSpec((None, 1, te), lambda c, i: (c * tpc + i, 0, 0)),  # tgt lane-dense
            ],
            out_specs=(
                pl.BlockSpec((te, eo_pad), lambda c, i: (c * tpc + i, 0)),          # attributes
                pl.BlockSpec((None, n_pad, out_pad), lambda c, i: (c, 0, 0)),       # per-core agg
                pl.BlockSpec((None, n_pad, 1), lambda c, i: (c, 0, 0)),             # per-core counts
            ),
        ),
        compiler_params=pltpu.CompilerParams(
            dimension_semantics=("parallel", "arbitrary"),  # edge axis carries the accumulator
            vmem_limit_bytes=vmem_limit,
        ),
        cost_estimate=pl.CostEstimate(flops=int(flops), transcendentals=0,
                                      bytes_accessed=bytes_accessed),
    )(xmsg_p, we_p, wattr_p, ep, gidx, tgt_row)

    # ---- cheap O(N*out_dim) combine: merge per-core partials, exact divide --
    agg_sum = jnp.sum(agg_p, axis=0)[:n, :out_dim]
    cnt_sum = jnp.sum(cnt_p, axis=0)[:n, :]
    agg_mean = agg_sum / jnp.maximum(cnt_sum, 1.0)          # scatter_mean (0 if isolated)
    embeddings = xnode[:, :out_dim] + _leaky_relu(xnode[:, out_dim:] + agg_mean)
    attributes = attr_p[:e_cnt, :eo_dim]
    return embeddings, attributes


def _kaiming_uniform(key, out_features, in_features, a=0.01):
    gain = math.sqrt(2.0 / (1.0 + a * a))
    bound = gain * math.sqrt(3.0 / in_features)
    return jax.random.uniform(key, (out_features, in_features),
                              minval=-bound, maxval=bound, dtype=jnp.float32)


def _reference_forward(x, edge_index, edge_attr, params):
    """Pure-JAX f32 reference mirroring the PyTorch module."""
    src = edge_index[0]
    tgt = edge_index[1]
    n_nodes = x.shape[0]
    msg = _leaky_relu(edge_attr @ params["W_e"].T
                      + x[src] @ params["W_hu"].T
                      + x[tgt] @ params["W_hw"].T)
    attr = msg @ params["lin_attr"].T
    seg_sum = jax.ops.segment_sum(msg, tgt, num_segments=n_nodes)
    counts = jax.ops.segment_sum(jnp.ones((msg.shape[0],), jnp.float32), tgt,
                                 num_segments=n_nodes)
    agg_mean = seg_sum / jnp.maximum(counts, 1.0)[:, None]
    emb = x @ params["lin_emb"].T + _leaky_relu(x @ params["weight2"].T + agg_mean)
    return emb, attr


if __name__ == "__main__":
    # Small deterministic problem with deliberately unaligned dims to exercise
    # all padding paths and a (2 core-groups x 2 tiles) edge grid.
    N_NODES, N_EDGES = 24, 40
    IN_DIM, EDGE_DIM, OUT_DIM = 20, 12, 24
    EDGE_OUT_DIM = EDGE_DIM  # edge_out_dim defaults to edge_dim

    root = jax.random.PRNGKey(0)
    keys = jax.random.split(root, 10)

    params = {
        "W_e": _kaiming_uniform(keys[0], OUT_DIM, EDGE_DIM),
        "W_hu": _kaiming_uniform(keys[1], OUT_DIM, IN_DIM),
        "W_hw": _kaiming_uniform(keys[2], OUT_DIM, IN_DIM),
        "weight2": _kaiming_uniform(keys[3], OUT_DIM, IN_DIM),
        "lin_emb": _kaiming_uniform(keys[4], OUT_DIM, IN_DIM),
        "lin_attr": _kaiming_uniform(keys[5], EDGE_OUT_DIM, OUT_DIM),
    }

    x = jax.random.normal(keys[6], (N_NODES, IN_DIM), dtype=jnp.float32)
    edge_attr = jax.random.normal(keys[7], (N_EDGES, EDGE_DIM), dtype=jnp.float32)
    src = jax.random.randint(keys[8], (N_EDGES,), 0, N_NODES, dtype=jnp.int32)
    tgt = jax.random.randint(keys[9], (N_EDGES,), 0, N_NODES, dtype=jnp.int32)
    edge_index = jnp.stack([src, tgt], axis=0)

    emb_ref, attr_ref = _reference_forward(x, edge_index, edge_attr, params)

    # bf16 compute path (default, fast)
    emb, attr = gnn_layer3_forward(x, edge_index, edge_attr, params, edge_tile=16)
    jax.block_until_ready((emb, attr))
    assert emb.shape == (N_NODES, OUT_DIM) and attr.shape == (N_EDGES, EDGE_OUT_DIM)
    assert jnp.allclose(emb, emb_ref, atol=8e-2, rtol=8e-2)
    assert jnp.allclose(attr, attr_ref, atol=8e-2, rtol=8e-2)

    # f32 compute path (near-exact)
    emb32, attr32 = gnn_layer3_forward(x, edge_index, edge_attr, params,
                                       edge_tile=16, compute_dtype=jnp.float32)
    jax.block_until_ready((emb32, attr32))
    assert jnp.allclose(emb32, emb_ref, atol=2e-2, rtol=2e-2)
    assert jnp.allclose(attr32, attr_ref, atol=2e-2, rtol=2e-2)

    print("KERNEL_OK")
</pallas_src>

<mosaic_0001>
module attributes {stable_mosaic.version = 11 : i64} {
  func.func @_gnn_layer3_kernel(%arg0: i32, %arg1: i32, %arg2: memref<48x128xbf16, #tpu.memory_space<vmem>>, %arg3: memref<128x128xbf16, #tpu.memory_space<vmem>>, %arg4: memref<128x128xbf16, #tpu.memory_space<vmem>>, %arg5: memref<16x128xbf16, #tpu.memory_space<vmem>>, %arg6: memref<1x16x2xi32, #tpu.memory_space<vmem>>, %arg7: memref<1x1x16xi32, #tpu.memory_space<vmem>>, %arg8: memref<16x128xf32, #tpu.memory_space<vmem>>, %arg9: memref<1x24x128xf32, #tpu.memory_space<vmem>>, %arg10: memref<1x24x1xf32, #tpu.memory_space<vmem>>) attributes {dimension_semantics = [#tpu.dimension_semantics<parallel>, #tpu.dimension_semantics<arbitrary>], iteration_bounds = array<i64: 2, 2>, scalar_prefetch = 0 : i64, scratch_operands = 0 : i64, tpu.core_type = #tpu.core_type<tc>, window_params = [{pipeline_mode = #tpu.pipeline_mode<synchronous>, transform_indices = @transform_0, window_bounds = array<i64: 48, 128>}, {pipeline_mode = #tpu.pipeline_mode<synchronous>, transform_indices = @transform_1, window_bounds = array<i64: 128, 128>}, {pipeline_mode = #tpu.pipeline_mode<synchronous>, transform_indices = @transform_2, window_bounds = array<i64: 128, 128>}, {transform_indices = @transform_3, window_bounds = array<i64: 16, 128>}, {transform_indices = @transform_4, window_bounds = array<i64: 1, 16, 2>}, {transform_indices = @transform_5, window_bounds = array<i64: 1, 1, 16>}, {transform_indices = @transform_6, window_bounds = array<i64: 16, 128>}, {transform_indices = @transform_7, window_bounds = array<i64: 1, 24, 128>}, {transform_indices = @transform_8, window_bounds = array<i64: 1, 24, 1>}]} {
    %c0_i32 = arith.constant 0 : i32
    %0 = arith.cmpi eq, %arg1, %c0_i32 : i32
    %1 = arith.extui %0 : i1 to i32
    %c0_i32_0 = arith.constant 0 : i32
    %2 = arith.cmpi ne, %1, %c0_i32_0 : i32
    scf.if %2 {
      %cst_34 = arith.constant 0.000000e+00 : f32
      %56 = vector.broadcast %cst_34 : f32 to vector<24x128xf32>
      %c0_35 = arith.constant 0 : index
      %c0_36 = arith.constant 0 : index
      %c0_37 = arith.constant 0 : index
      %57 = vector.load %arg9[%c0_35, %c0_36, %c0_37] : memref<1x24x128xf32, #tpu.memory_space<vmem>>, vector<1x24x128xf32>
      %58 = vector.shape_cast %57 : vector<1x24x128xf32> to vector<24x128xf32>
      %59 = vector.shape_cast %56 : vector<24x128xf32> to vector<1x24x128xf32>
      tpu.vector_store %arg9[%c0_35, %c0_36, %c0_37], %59 {strides = array<i32>} : memref<1x24x128xf32, #tpu.memory_space<vmem>>, vector<1x24x128xf32>,
      %cst_38 = arith.constant 0.000000e+00 : f32
      %60 = vector.broadcast %cst_38 : f32 to vector<24x1xf32>
      %c0_39 = arith.constant 0 : index
      %c0_40 = arith.constant 0 : index
      %c0_41 = arith.constant 0 : index
      %61 = vector.load %arg10[%c0_39, %c0_40, %c0_41] : memref<1x24x1xf32, #tpu.memory_space<vmem>>, vector<1x24x1xf32>
      %62 = vector.shape_cast %61 : vector<1x24x1xf32> to vector<24x1xf32>
      %63 = vector.shape_cast %60 : vector<24x1xf32> to vector<1x24x1xf32>
      tpu.vector_store %arg10[%c0_39, %c0_40, %c0_41], %63 {strides = array<i32>} : memref<1x24x1xf32, #tpu.memory_space<vmem>>, vector<1x24x1xf32>,
    } else {
    }
    %c0 = arith.constant 0 : index
    %c0_1 = arith.constant 0 : index
    %c0_2 = arith.constant 0 : index
    %3 = vector.load %arg6[%c0, %c0_1, %c0_2] : memref<1x16x2xi32, #tpu.memory_space<vmem>>, vector<1x16x2xi32>
    %4 = vector.shape_cast %3 : vector<1x16x2xi32> to vector<16x2xi32>
    %5 = tpu.iota {dimensions = array<i32: 1>} : vector<16x48xi32>
    %6 = vector.extract_strided_slice %4 {offsets = [0, 0], sizes = [16, 1], strides = [1, 1]} : vector<16x2xi32> to vector<16x1xi32>
    %7 = vector.broadcast %6 : vector<16x1xi32> to vector<16x48xi32>
    %8 = arith.cmpi eq, %5, %7 : vector<16x48xi32>
    %9 = vector.extract_strided_slice %4 {offsets = [0, 1], sizes = [16, 1], strides = [1, 1]} : vector<16x2xi32> to vector<16x1xi32>
    %10 = vector.broadcast %9 : vector<16x1xi32> to vector<16x48xi32>
    %11 = arith.cmpi eq, %5, %10 : vector<16x48xi32>
    %12 = arith.ori %8, %11 : vector<16x48xi1>
    %13 = arith.extui %12 : vector<16x48xi1> to vector<16x48xi32>
    %14 = arith.sitofp %13 : vector<16x48xi32> to vector<16x48xf32>
    %15 = arith.truncf %14 : vector<16x48xf32> to vector<16x48xbf16>
    %c0_3 = arith.constant 0 : index
    %c0_4 = arith.constant 0 : index
    %16 = vector.load %arg2[%c0_3, %c0_4] : memref<48x128xbf16, #tpu.memory_space<vmem>>, vector<48x128xbf16>
    %cst = arith.constant dense<0.000000e+00> : vector<16x128xf32>
    %17 = tpu.matmul %15, %16, %cst {dimension_numbers = #tpu.dot_dimension_numbers<[1], [0], [0], [1], [0, 0, 1, 1], [], []>} : vector<16x48xbf16>, vector<48x128xbf16>, vector<16x128xf32> -> vector<16x128xf32>
    %c0_5 = arith.constant 0 : index
    %c0_6 = arith.constant 0 : index
    %18 = vector.load %arg5[%c0_5, %c0_6] : memref<16x128xbf16, #tpu.memory_space<vmem>>, vector<16x128xbf16>
    %c0_7 = arith.constant 0 : index
    %c0_8 = arith.constant 0 : index
    %19 = vector.load %arg3[%c0_7, %c0_8] : memref<128x128xbf16, #tpu.memory_space<vmem>>, vector<128x128xbf16>
    %cst_9 = arith.constant dense<0.000000e+00> : vector<16x128xf32>
    %20 = tpu.matmul %18, %19, %cst_9 {dimension_numbers = #tpu.dot_dimension_numbers<[1], [0], [0], [1], [0, 0, 1, 1], [], []>} : vector<16x128xbf16>, vector<128x128xbf16>, vector<16x128xf32> -> vector<16x128xf32>
    %21 = arith.addf %17, %20 : vector<16x128xf32>
    %cst_10 = arith.constant 0.000000e+00 : f32
    %22 = vector.broadcast %cst_10 : f32 to vector<16x128xf32>
    %23 = arith.cmpf oge, %21, %22 : vector<16x128xf32>
    %cst_11 = arith.constant 0.00999999977 : f32
    %24 = vector.broadcast %cst_11 : f32 to vector<16x128xf32>
    %25 = arith.mulf %24, %21 : vector<16x128xf32>
    %26 = arith.select %23, %21, %25 : vector<16x128xi1>, vector<16x128xf32>
    %27 = arith.truncf %26 : vector<16x128xf32> to vector<16x128xbf16>
    %c0_12 = arith.constant 0 : index
    %c0_13 = arith.constant 0 : index
    %28 = vector.load %arg4[%c0_12, %c0_13] : memref<128x128xbf16, #tpu.memory_space<vmem>>, vector<128x128xbf16>
    %cst_14 = arith.constant dense<0.000000e+00> : vector<16x128xf32>
    %29 = tpu.matmul %27, %28, %cst_14 {dimension_numbers = #tpu.dot_dimension_numbers<[1], [0], [0], [1], [0, 0, 1, 1], [], []>} : vector<16x128xbf16>, vector<128x128xbf16>, vector<16x128xf32> -> vector<16x128xf32>
    %c0_15 = arith.constant 0 : index
    %c0_16 = arith.constant 0 : index
    %30 = vector.load %arg8[%c0_15, %c0_16] : memref<16x128xf32, #tpu.memory_space<vmem>>, vector<16x128xf32>
    tpu.vector_store %arg8[%c0_15, %c0_16], %29 {strides = array<i32>} : memref<16x128xf32, #tpu.memory_space<vmem>>, vector<16x128xf32>,
    %c0_17 = arith.constant 0 : index
    %c0_18 = arith.constant 0 : index
    %c0_19 = arith.constant 0 : index
    %31 = vector.load %arg7[%c0_17, %c0_18, %c0_19] : memref<1x1x16xi32, #tpu.memory_space<vmem>>, vector<1x1x16xi32>
    %32 = vector.shape_cast %31 : vector<1x1x16xi32> to vector<1x16xi32>
    %33 = tpu.iota {dimensions = array<i32: 0>} : vector<24x16xi32>
    %34 = vector.broadcast %32 : vector<1x16xi32> to vector<24x16xi32>
    %35 = arith.cmpi eq, %33, %34 : vector<24x16xi32>
    %c0_20 = arith.constant 0 : index
    %c0_21 = arith.constant 0 : index
    %c0_22 = arith.constant 0 : index
    %36 = vector.load %arg9[%c0_20, %c0_21, %c0_22] : memref<1x24x128xf32, #tpu.memory_space<vmem>>, vector<1x24x128xf32>
    %37 = vector.shape_cast %36 : vector<1x24x128xf32> to vector<24x128xf32>
    %38 = arith.extui %35 : vector<24x16xi1> to vector<24x16xi32>
    %39 = arith.sitofp %38 : vector<24x16xi32> to vector<24x16xf32>
    %40 = arith.truncf %39 : vector<24x16xf32> to vector<24x16xbf16>
    %cst_23 = arith.constant dense<0.000000e+00> : vector<24x128xf32>
    %41 = tpu.matmul %40, %27, %cst_23 {dimension_numbers = #tpu.dot_dimension_numbers<[1], [0], [0], [1], [0, 0, 1, 1], [], []>} : vector<24x16xbf16>, vector<16x128xbf16>, vector<24x128xf32> -> vector<24x128xf32>
    %42 = arith.addf %37, %41 : vector<24x128xf32>
    %c0_24 = arith.constant 0 : index
    %c0_25 = arith.constant 0 : index
    %c0_26 = arith.constant 0 : index
    %43 = vector.load %arg9[%c0_24, %c0_25, %c0_26] : memref<1x24x128xf32, #tpu.memory_space<vmem>>, vector<1x24x128xf32>
    %44 = vector.shape_cast %43 : vector<1x24x128xf32> to vector<24x128xf32>
    %45 = vector.shape_cast %42 : vector<24x128xf32> to vector<1x24x128xf32>
    tpu.vector_store %arg9[%c0_24, %c0_25, %c0_26], %45 {strides = array<i32>} : memref<1x24x128xf32, #tpu.memory_space<vmem>>, vector<1x24x128xf32>,
    %c0_27 = arith.constant 0 : index
    %c0_28 = arith.constant 0 : index
    %c0_29 = arith.constant 0 : index
    %46 = vector.load %arg10[%c0_27, %c0_28, %c0_29] : memref<1x24x1xf32, #tpu.memory_space<vmem>>, vector<1x24x1xf32>
    %47 = vector.shape_cast %46 : vector<1x24x1xf32> to vector<24x1xf32>
    %48 = arith.extui %35 : vector<24x16xi1> to vector<24x16xi32>
    %49 = arith.sitofp %48 : vector<24x16xi32> to vector<24x16xf32>
    %cst_30 = arith.constant dense<0.000000e+00> : vector<24xf32>
    %50 = vector.multi_reduction <add>, %49, %cst_30 [1] : vector<24x16xf32> to vector<24xf32>
    %51 = vector.shape_cast %50 : vector<24xf32> to vector<24x1xf32>
    %52 = arith.addf %47, %51 : vector<24x1xf32>
    %c0_31 = arith.constant 0 : index
    %c0_32 = arith.constant 0 : index
    %c0_33 = arith.constant 0 : index
    %53 = vector.load %arg10[%c0_31, %c0_32, %c0_33] : memref<1x24x1xf32, #tpu.memory_space<vmem>>, vector<1x24x1xf32>
    %54 = vector.shape_cast %53 : vector<1x24x1xf32> to vector<24x1xf32>
    %55 = vector.shape_cast %52 : vector<24x1xf32> to vector<1x24x1xf32>
    tpu.vector_store %arg10[%c0_31, %c0_32, %c0_33], %55 {strides = array<i32>} : memref<1x24x1xf32, #tpu.memory_space<vmem>>, vector<1x24x1xf32>,
    return
  }
  func.func @transform_0(%arg0: i32, %arg1: i32) -> (i32, i32) {
    %c0_i32 = arith.constant 0 : i32
    %c0_i32_0 = arith.constant 0 : i32
    %c0_i32_1 = arith.constant 0 : i32
    return %c0_i32, %c0_i32_0 : i32, i32
  }
  func.func @transform_1(%arg0: i32, %arg1: i32) -> (i32, i32) {
    %c0_i32 = arith.constant 0 : i32
    %c0_i32_0 = arith.constant 0 : i32
    %c0_i32_1 = arith.constant 0 : i32
    return %c0_i32, %c0_i32_0 : i32, i32
  }
  func.func @transform_2(%arg0: i32, %arg1: i32) -> (i32, i32) {
    %c0_i32 = arith.constant 0 : i32
    %c0_i32_0 = arith.constant 0 : i32
    %c0_i32_1 = arith.constant 0 : i32
    return %c0_i32, %c0_i32_0 : i32, i32
  }
  func.func @transform_3(%arg0: i32, %arg1: i32) -> (i32, i32) {
    %c2_i32 = arith.constant 2 : i32
    %0 = arith.muli %arg0, %c2_i32 : i32
    %1 = arith.addi %0, %arg1 : i32
    %c0_i32 = arith.constant 0 : i32
    %c0_i32_0 = arith.constant 0 : i32
    return %1, %c0_i32 : i32, i32
  }
  func.func @transform_4(%arg0: i32, %arg1: i32) -> (i32, i32, i32) {
    %c2_i32 = arith.constant 2 : i32
    %0 = arith.muli %arg0, %c2_i32 : i32
    %1 = arith.addi %0, %arg1 : i32
    %c0_i32 = arith.constant 0 : i32
    %c0_i32_0 = arith.constant 0 : i32
    %c0_i32_1 = arith.constant 0 : i32
    return %1, %c0_i32, %c0_i32_0 : i32, i32, i32
  }
  func.func @transform_5(%arg0: i32, %arg1: i32) -> (i32, i32, i32) {
    %c2_i32 = arith.constant 2 : i32
    %0 = arith.muli %arg0, %c2_i32 : i32
    %1 = arith.addi %0, %arg1 : i32
    %c0_i32 = arith.constant 0 : i32
    %c0_i32_0 = arith.constant 0 : i32
    %c0_i32_1 = arith.constant 0 : i32
    return %1, %c0_i32, %c0_i32_0 : i32, i32, i32
  }
  func.func @transform_6(%arg0: i32, %arg1: i32) -> (i32, i32) {
    %c2_i32 = arith.constant 2 : i32
    %0 = arith.muli %arg0, %c2_i32 : i32
    %1 = arith.addi %0, %arg1 : i32
    %c0_i32 = arith.constant 0 : i32
    %c0_i32_0 = arith.constant 0 : i32
    return %1, %c0_i32 : i32, i32
  }
  func.func @transform_7(%arg0: i32, %arg1: i32) -> (i32, i32, i32) {
    %c0_i32 = arith.constant 0 : i32
    %c0_i32_0 = arith.constant 0 : i32
    %c0_i32_1 = arith.constant 0 : i32
    return %arg0, %c0_i32, %c0_i32_0 : i32, i32, i32
  }
  func.func @transform_8(%arg0: i32, %arg1: i32) -> (i32, i32, i32) {
    %c0_i32 = arith.constant 0 : i32
    %c0_i32_0 = arith.constant 0 : i32
    %c0_i32_1 = arith.constant 0 : i32
    return %arg0, %c0_i32, %c0_i32_0 : i32, i32, i32
  }
}

</mosaic_0001>

<bundles_post_ra>
// kernel: tpu_custom_call.1
= control target key start
LH: loop header
LB: loop body
LE: loop exit
PB: predicated region body
PF: predicated region fallthrough
CT: control target
= control target key end

     0   :  { %s2237_s0 = inlined_call_operand.hbm [shape: bf16[48,128], index: 0, kind: input, shape index: {}]   ;;  %s2238_s1 = inlined_call_operand.vmem [shape: bf16[128,128], index: 1, kind: input, shape index: {}]   ;;  %s2239_s2 = inlined_call_operand.hbm [shape: bf16[128,128], index: 2, kind: input, shape index: {}]   ;;  %s2240_s3 = inlined_call_operand.hbm [shape: bf16[64,128], index: 3, kind: input, shape index: {}]   ;;  %s2241_s4 = inlined_call_operand.vmem [shape: s32[4,16,2], index: 4, kind: input, shape index: {}]   ;;  %s2242_s5 = inlined_call_operand.vmem [shape: s32[4,1,16], index: 5, kind: input, shape index: {}]   ;;  %s2243_s6 = inlined_call_operand.hbm [shape: f32[64,128], index: 6, kind: output, shape index: {0}]   ;;  %s2244_s7 = inlined_call_operand.hbm [shape: f32[2,24,128], index: 7, kind: output, shape index: {1}]   ;;  %s2245_s8 = inlined_call_operand.vmem [shape: f32[2,24,1], index: 8, kind: output, shape index: {2}]  }
   0x1   :  { %2270 = sst [smem:[#allocation27_spill]] %s2237_s0 }
   0x2   :  { %2271 = sst [smem:[#allocation28_spill]] %s2238_s1 }
   0x3   :  { %2272 = sst [smem:[#allocation29_spill]] %s2239_s2 }
   0x4   :  { %2273 = sst [smem:[#allocation30_spill]] %s2240_s3 }
   0x5   :  { %2274 = sst [smem:[#allocation31_spill]] %s2241_s4 }
   0x6   :  { %2275 = sst [smem:[#allocation32_spill]] %s2242_s5 }
   0x7   :  { %2276 = sst [smem:[#allocation33_spill]] %s2243_s6 }
   0x8   :  { %2277 = sst [smem:[#allocation34_spill]] %s2244_s7 }
   0x9   :  { %2278 = sst [smem:[#allocation35_spill]] %s2245_s8 }
   0xa   :  { %14 = vsyncpa [#allocation3], 0 }
   0xb   :  { %15 = vsyncpa [#allocation6], 0 }
   0xc   :  { %16 = vsyncpa [#allocation4], 0 }
   0xd   :  { %18 = vsyncpa [#allocation4 + $0x1], 0 }
   0xe   :  { %19 = vsyncpa [#allocation10], 0 }
   0xf   :  { %21 = vsyncpa [#allocation10 + $0x1], 0  ;;  %s1757_s27 = smov 0   ;;  %s1759_s28 = smov 0  }
  0x10   :  { %s1761_s29 = smov 0   ;;  %s1763_s30 = smov 0  }
  0x11   :  { %s1765_s9 = smov 0   ;;  %s1767_s10 = smov 0  }
  0x12   :  { %s1769_s11 = smov 0   ;;  %s1771_s12 = smov 0  }
  0x13   :  { %s1773_s13 = smov 0   ;;  %s1775_s14 = smov 0  }
  0x14   :  { %s1777_s15 = smov 0  }
  0x15 LB: > { %2279 = sst [smem:[#allocation16_spill]] %s1656_s27  ;;  %s1813_s16 = sadd.s32 4294967295, %s1696_s15   ;;  %s1696_s15 = sphi %s1777_s15, %s27_s15   ;;  %s1692_s14 = sphi %s1775_s14, %s2336_s14   ;;  %s1688_s13 = sphi %s1773_s13, %s2335_s13   ;;  %s1684_s12 = sphi %s1771_s12, %s2334_s12   ;;  %s1680_s11 = sphi %s1769_s11, %s2333_s11   ;;  %s1676_s10 = sphi %s1767_s10, %s2342_s10   ;;  %s1672_s9 = sphi %s1765_s9, %s2341_s9   ;;  %s1668_s30 = sphi %s1763_s30, %s2340_s30   ;;  %s1664_s29 = sphi %s1761_s29, %s2339_s29   ;;  %s1660_s28 = sphi %s1759_s28, %s2338_s28   ;;  %s1656_s27 = sphi %s1757_s27, %s2337_s27  }
  0x16   : > { %2280 = sst [smem:[#allocation17_spill]] %s1668_s30  ;;  %s1133_s17 = sadd.s32 4294967294, %s1696_s15  }
  0x17   : > { %2281 = sst [smem:[#allocation18_spill]] %s1688_s13  ;;  %p120_p0 = scmp.ne.s32.totalorder %s1676_s10, %s1672_s9 }
  0x18   : > { %2282 = sst [smem:[#allocation19_spill]] %s1692_s14  ;;  %p121_p1 = scmp.eq.s32.totalorder %s1696_s15, 0 }
  0x19   : > { %p126_p2 = scmp.ne.s32.totalorder %s1672_s9, %s1668_s30  ;;  %p2246_p3 = scmp.eq.s32.totalorder %s1813_s16, 0 }
  0x1a   : > { %p1822_p4 = por %p121_p1, %p120_p0  ;;  %p214_p5 = scmp.eq.s32.totalorder %s1813_s16, 3 }
  0x1b   : > { %p1829_p6 = por %p2246_p3, %p126_p2  ;;  %p220_p7 = scmp.eq.s32.totalorder %s1133_s17, 3 }
  0x1c   : > { %p1833_p8 = por %p214_p5, %p120_p0  ;;  %p239_p10 = scmp.ne.s32.totalorder %s1664_s29, %s1660_s28 }
  0x1d   : > { %s2284_s19 = scalar_select %p1829_p6, 1, 0 }
  0x1e   : > { %s2285_s20 = scalar_select %p1833_p8, 1, 0 }
  0x1f   : > { %p1838_p9 = por %p220_p7, %p126_p2  ;;  %p245_p11 = scmp.ne.s32.totalorder %s1660_s28, %s1656_s27 }
  0x20   : > { %2286 = sst [smem:[#allocation20_spill]] %s2285_s20  ;;  %p1142_p12 = scmp.ge.s32.totalorder %s1696_s15, 1 }
  0x21   : > { %s2287_s22 = scalar_select %p1838_p9, 1, 0 }
  0x22   : > { %p1847_p13 = por %p239_p10, %p214_p5  ;;  %p279_p1 = scmp.lt.s32.totalorder %s1696_s15, 5 }
  0x23   : > { %2288 = sst [smem:[#allocation21_spill]] %s2287_s22  ;;  %p1852_p3 = por %p245_p11, %p220_p7 }
  0x24   : > { %s2289_s23 = scalar_select %p1847_p13, 1, 0 }
  0x25   : > { %s2291_s24 = scalar_select %p1852_p3, 1, 0 }
  0x26   : > { %2290 = sst [smem:[#allocation22_spill]] %s2289_s23  ;;  %p1856_p0 = pnand %p1142_p12, %p279_p1 }
  0x27   : > { %2292 = sst [smem:[#allocation23_spill]] %s2291_s24  ;;  %s1698_s26 = smov [#allocation2]  }
  0x28   : > { %s2293_s25 = scalar_select %p1856_p0, 1, 0 }
  0x29   : > { %s291_s17 = sshll.u32 %s1698_s26, 4  ;;  %p1302_p2 = pneg %p1856_p0  ;;  %s292_s17 = int_to_ptr.vmem [resolvable:$true] %s291_s17 }
  0x2a   : > { %p2294_p9 = scmp.eq.s32.totalorder %s1813_s16, 0  ;;  %p1322_p7 = scmp.lt.s32.totalorder %s1696_s15, 4 }
  0x2b   : > { %s2297_s0 = sld [smem:[#allocation27_spill]] }
  0x2c   : > { %p1864_p5 = pnand %p1302_p2, %p2294_p9  ;;  %p1871_p10 = pnand %p1322_p7, %p1822_p4 }
  0x2e   : > { %s2296_s24 = scalar_select %p1871_p10, 1, 0 }
  0x2f   : > { %p1450_p9 = pneg %p1864_p5 }
  0x31   : > { %s1448_s26 = scalar_lea.hbm %s2297_s0, 384 }
  0x32   : > { %p1449_p11 = scmp.ne.s32.totalorder %s2297_s0, %s1448_s26  ;;  %p1455_p4 = scmp.lt.u32.totalorder %s1448_s26, %s2297_s0 }
  0x34   : > { %p1451_p12 = pnand %p1450_p9, %p1449_p11 }
  0x36   : > { %p1452_p1 = pneg %p1451_p12 }
  0x38   : > { %p1457_p2 = pnand %p1455_p4, %p1452_p1 }
  0x3a   : > { %1460 = shalt.err (!%p1457_p2)
}
  0x3b   : > { %s1461_s6 = scalar_lea.vmem %s292_s17, 384  ;;  %p1469_p8 = scmp.lt.s32.totalorder %s292_s17, %s292_s17 }
  0x3c   : > { %p1462_p7 = scmp.ne.s32.totalorder %s292_s17, %s1461_s6  ;;  %p1470_p6 = scmp.lt.s32.totalorder %s1461_s6, %s1461_s6 }
  0x3e   : > { %p1464_p3 = pnand %p1462_p7, %p1450_p9  ;;  %p1471_p0 = por %p1470_p6, %p1469_p8 }
  0x40   : > { %p1465_p13 = pneg %p1464_p3 }
  0x42   : > { %p1472_p10 = pnand %p1471_p0, %p1465_p13 }
  0x44   : > { %1475 = shalt.err (!%p1472_p10)
}
  0x45   : > { %s2263_s7 = smov 64   ;;  %s2264_s27 = smov 4  }
  0x46   : > { %1305 = dma.hbm_to_vmem [thread:$0]  (!%p1864_p5), %s2297_s0, 384, %s292_s17, [#allocation3], %s2263_s7, %s2263_s7, %s2264_s27  }
  0x47   : > { %s1701_s23 = smov [#allocation5]   ;;  %s2298_s2 = sld [smem:[#allocation29_spill]] }
  0x48   : > { %s307_s26 = sshll.u32 %s1701_s23, 4  ;;  %s308_s26 = int_to_ptr.vmem [resolvable:$true] %s307_s26 }
  0x4d   : > { %s1476_s20 = scalar_lea.hbm %s2298_s2, 1024 }
  0x4e   : > { %p1477_p3 = scmp.ne.s32.totalorder %s2298_s2, %s1476_s20  ;;  %p1483_p13 = scmp.lt.u32.totalorder %s1476_s20, %s2298_s2 }
  0x50   : > { %p1479_p6 = pnand %p1477_p3, %p1450_p9 }
  0x52   : > { %p1480_p8 = pneg %p1479_p6 }
  0x54   : > { %p1485_p0 = pnand %p1483_p13, %p1480_p8 }
  0x56   : > { %1488 = shalt.err (!%p1485_p0)
}
  0x57   : > { %s1489_s17 = scalar_lea.vmem %s308_s26, 1024  ;;  %p1497_p1 = scmp.lt.s32.totalorder %s308_s26, %s308_s26 }
  0x58   : > { %p1490_p10 = scmp.ne.s32.totalorder %s308_s26, %s1489_s17  ;;  %p1498_p4 = scmp.lt.s32.totalorder %s1489_s17, %s1489_s17 }
  0x5a   : > { %p1492_p11 = pnand %p1490_p10, %p1450_p9  ;;  %p1499_p2 = por %p1498_p4, %p1497_p1 }
  0x5c   : > { %p1493_p12 = pneg %p1492_p11 }
  0x5e   : > { %p1500_p7 = pnand %p1499_p2, %p1493_p12 }
  0x60   : > { %1503 = shalt.err (!%p1500_p7)
}
  0x61   : > { %1308 = dma.hbm_to_vmem [thread:$0]  (!%p1864_p5), %s2298_s2, 1024, %s308_s26, [#allocation6], %s2263_s7, %s2263_s7, %s2264_s27  }
  0x62   : > { %s36_s5 = sadd.s32 1, %s1688_s13  ;;  %s39_s8 = sadd.s32 1, %s1692_s14 }
  0x63   : > { %p37_p9 = scmp.ge.s32.totalorder %s36_s5, 2  ;;  %s1134_s20 = sshll.u32 %s1692_s14, 1 }
  0x64   : > { %s107_s21 = sadd.s32 %s1688_s13, %s1134_s20  ;;  %s113_s30 = sadd.s32 1, %s1676_s10 }
  0x65   : > { %s2344_s5 = smov (%p37_p9, %s36_s5), 0  ;;  %s2346_s8 = smov (!%p37_p9, %s39_s8), %s1692_s14 }
  0x66   : > { %2299 = sst [smem:[#allocation24_spill]] %s2344_s5  ;;  %s321_s22 = sand.u32 1, %s1696_s15  }
  0x67   : > { %s323_s23 = sand.u32 1, %s1676_s10   ;;  %p41_p3 = scmp.ge.s32.totalorder %s2346_s8, 2 }
  0x68   : > { %s1146_s18 = sshll.u32 %s323_s23, 3  ;;  %s1197_s6 = sshll.u32 %s107_s21, 7 }
  0x69   : > { %s2348_s8 = smov (%p41_p3, %s2346_s8), 0  ;;  %s2301_s3 = sld [smem:[#allocation30_spill]] }
  0x6a   : > { %2300 = sst [smem:[#allocation25_spill]] %s2348_s8  ;;  %s1135_s4 = sshll.u32 %s2348_s8, 1 }
  0x6b   : > { %s226_s20 = ssub.s32 %s1692_s14, %s2348_s8  ;;  %s109_s7 = sadd.s32 %s1135_s4, %s2344_s5 }
  0x6c   : > { %p227_p5 = scmp.eq.s32.totalorder %s226_s20, 0  ;;  %s110_s23 = ssub.s32 %s107_s21, %s109_s7 }
  0x6d   : > { %s325_s27 = scalar_lea.vmem [#allocation7], %s1146_s18  ;;  %p111_p6 = scmp.eq.s32.totalorder %s110_s23, 0 }
  0x6e   : > { %s334_s0 = sshll.u32 %s325_s27, 4  ;;  %s2302_s26 = sadd.s32 1, %s1664_s29  ;;  %s1944_s0 = int_to_ptr.vmem [resolvable:$true] %s334_s0 }
  0x6f   : > { %s1938_s1 = scalar_lea.hbm %s2301_s3, %s1197_s6  ;;  %s1954_s2 = scalar_lea.sflag [#allocation3], %s321_s22 }
  0x70   : > { %s1949_s17 = scalar_select %p227_p5, %s1664_s29, %s2302_s26  }
  0x71   : > { %s1952_s6 = scalar_select %p111_p6, %s1676_s10, %s113_s30  }
  0x72   : > { %s1504_s13 = scalar_lea.hbm %s1938_s1, 128  ;;  %p2304_p13 = scmp.ne.s32.totalorder %s2296_s24, 0 }
  0x73   : > { %2303 = sst [smem:[#allocation26_spill]] %s1952_s6  ;;  %p1505_p8 = scmp.ne.s32.totalorder %s1938_s1, %s1504_s13 }
  0x74   : > { %p1506_p0 = pneg %p2304_p13  ;;  %s1509_s21 = scalar_lea.hbm %s2301_s3, 512 }
  0x75   : > { %p1510_p12 = scmp.lt.u32.totalorder %s1938_s1, %s2301_s3  ;;  %p1511_p1 = scmp.lt.u32.totalorder %s1509_s21, %s1504_s13 }
  0x76   : > { %p1507_p10 = pnand %p1506_p0, %p1505_p8  ;;  %p1513_p2 = scmp.lt.u32.totalorder %s1504_s13, %s1938_s1 }
  0x77   : > { %p1512_p4 = por %p1511_p1, %p1510_p12 }
  0x78   : > { %p1508_p11 = pneg %p1507_p10 }
  0x79   : > { %p1514_p7 = por %p1513_p2, %p1512_p4 }
  0x7b   : > { %p1515_p9 = pnand %p1514_p7, %p1508_p11 }
  0x7d   : > { %1518 = shalt.err (!%p1515_p9)
}
  0x7e   : > { %s1519_s30 = scalar_lea.vmem %s1944_s0, 128  ;;  %s1702_s22 = smov [#allocation7]  }
  0x7f   : > { %p1520_p3 = scmp.ne.s32.totalorder %s1944_s0, %s1519_s30  ;;  %s1524_s20 = sshll.u32 %s1702_s22, 4  ;;  %s1525_s20 = int_to_ptr.vmem [resolvable:$false] %s1524_s20 }
  0x80   : > { %s1526_s23 = scalar_lea.vmem %s1525_s20, 256  ;;  %p1527_p8 = scmp.lt.s32.totalorder %s1944_s0, %s1525_s20 }
  0x81   : > { %p1522_p5 = pnand %p1520_p3, %p1506_p0  ;;  %p1528_p10 = scmp.lt.s32.totalorder %s1526_s23, %s1519_s30 }
  0x83   : > { %p1523_p6 = pneg %p1522_p5  ;;  %p1529_p12 = por %p1528_p10, %p1527_p8 }
  0x85   : > { %p1530_p1 = pnand %p1529_p12, %p1523_p6 }
  0x87   : > { %1533 = shalt.err (!%p1530_p1)
}
  0x88   : > { %s2305_s13 = smov 4   ;;  %s2306_s26 = smov 64  }
  0x89   : > { %1312 = dma.hbm_to_vmem [thread:$0]  (!%p2304_p13), %s1938_s1, 128, %s1944_s0, %s1954_s2, %s2306_s26, %s2306_s26, %s2305_s13  }
  0x8a   : > { %p2307_p0 = scmp.ne.s32.totalorder %s2293_s25, 0 }
  0x8b   : > { %p2308_p11 = scmp.eq.s32.totalorder (!%p2307_p0), %s1813_s16, 0 }
  0x8c   : > { %368 = sbr.rel (%p2307_p0) target bundleno = 789 (0x315), region = 44 }
  0x93   : > { %1635 = dma.done.wait (%p2308_p11), [#allocation3], 384   ;;  %p2309_p4 = pmov %p2308_p11 }
  0x95   : > { %1637 = vsyncadd (%p2309_p4), [#allocation3], 4294966912  ;;  %p2310_p2 = pmov %p2309_p4 }
  0x97   : > { %1639 = dma.done.wait (%p2310_p2), [#allocation6], 1024   ;;  %p2311_p7 = pmov %p2310_p2 }
  0x98   : > { %s378_s24 = sand.u32 1, %s1813_s16   ;;  %s1997_s0 = sand.u32 1, %s1672_s9  }
  0x99   : > { %1641 = vsyncadd (%p2311_p7), [#allocation6], 4294966272  ;;  %s1153_s2 = sshll.u32 %s1997_s0, 3  ;;  %s379_s25 = scalar_lea.sflag [#allocation3], %s378_s24 }
  0x9a   : > { %s2000_s1 = scalar_lea.vmem [#allocation7], %s1153_s2  ;;  %p2312_p13 = scmp.ne.s32.totalorder %s2284_s19, 0 }
  0x9c   : > { %1643 = dma.done.wait (%p2312_p13), %s379_s25, 128  }
  0x9d   : > { %1645 = vsyncadd (%p2312_p13), %s379_s25, 4294967168  ;;  %s1154_s16 = sshll.u32 %s1997_s0, 4  ;;  %s2266_s7 = sand.u32 1, %s1660_s28  }
  0x9e   : > { %s1285_s27 = smul.u32 24, %s2266_s7  ;;  %s1155_s21 = sshll.u32 %s1684_s12, 1 }
  0x9f   : > { %p459_p9 = scmp.lt.s32.totalorder %s1684_s12, 1  ;;  %s2013_s18 = sadd.s32 %s1680_s11, %s1155_s21 }
  0xa0   : > { %p442_p3 = scmp.lt.s32.totalorder %s2013_s18, 3  ;;  %s2313_s13 = sld [smem:[#allocation32_spill]] }
  0xa1   : > { %s460_s19 = scalar_select %p459_p9, %s1684_s12, 1 }
  0xa2   : > { %s2018_s4 = scalar_select %p442_p3, %s2013_s18, 3 }
  0xa3   : > { %s1286_s30 = smul.u32 24, %s460_s19  ;;  %s2314_s25 = sld [smem:[#allocation31_spill]] }
  0xa4   : > { %s1198_s22 = sshll.u32 %s2018_s4, 4  ;;  %s2315_s8 = sld [smem:[#allocation35_spill]] }
  0xa5   : > { %s2033_s14 = scalar_lea.vmem [#allocation8], %s1154_s16  ;;  %s2035_s6 = scalar_lea.vmem [#allocation9], %s1285_s27 }
  0xa6   : > { %s453_s26 = scalar_lea.vmem %s2313_s13, %s2018_s4  ;;  %p1160_p5 = scmp.ne.s32.totalorder %s1680_s11, 0 }
  0xa7   : > { %vm472_vm0 = vcmask (!%p1160_p5), 7168   ;;  %v1703_v0 = vmov (!%p1160_p5), 0.0  }
  0xa8   : > { %468 = sbr.rel (%p1160_p5) target bundleno = 175 (0xaf), region = 60  ;;  %469 = vst [vmem:[%s2035_s6] sm:$0xff] (!%p1160_p5), %v1703_v0  ;;  %470 = vst [vmem:[%s2035_s6 + $0x8] sm:$0xff] (!%p1160_p5), %v1703_v0 }
  0xa9   : > { %s446_s7 = scalar_lea.vmem %s2314_s25, %s1198_s22  ;;  %471 = vst [vmem:[%s2035_s6 + $0x10] sm:$0xff] (!%p1160_p5), %v1703_v0 }
  0xaa   : > { %s2031_s5 = scalar_lea.vmem %s2315_s8, %s1286_s30 }
  0xab   : > { %473 = vst.msk [vmem:[%s2031_s5] sm:$0xff] (!%p1160_p5), %vm472_vm0, %v1703_v0  ;;  %474 = vst.msk [vmem:[%s2031_s5 + $0x8] sm:$0xff] (!%p1160_p5), %vm472_vm0, %v1703_v0 }
  0xac   : > { %475 = vst.msk [vmem:[%s2031_s5 + $0x10] sm:$0xff] (!%p1160_p5), %vm472_vm0, %v1703_v0 }
  0xaf PF: > { %v476_v1 = vld [vmem:[%s446_s7] sm:$0xff]  ;;  %s2316_s11 = sld [smem:[#allocation28_spill]]  ;;  %v1704_v3 = vmov 1   ;;  %v1705_v4 = vmov 0   ;;  %v477_v5 = vld [vmem:[%s446_s7 + $0x8] sm:$0xff]  ;;  %v1706_v6 = vmov 0.0   ;;  %v478_v24 = vlaneseq }
  0xb0   : > { %1426 = vset.pattern.permute.xlu1 %v1704_v3  ;;  %1425 = vset.pattern.permute.xlu0 %v1705_v4  ;;  %vm1707_vm1 = vmmov 0   ;;  %v1440_v10 = vld [vmem:[#allocation5] sm:$0xff]   ;;  %v1441_v11 = vld [vmem:[#allocation5 + $0x8] sm:$0xff]   ;;  %v1442_v13 = vld [vmem:[#allocation5 + $0x10] sm:$0xff]   ;;  %vm640_vm8 = vcmask 392192   ;;  %vm822_vm12 = vcmask 130048  }
  0xb1   : > { %489 = vperm.xlu1 %1426, %v476_v1   ;;  %481 = vperm.xlu0 %1425, %v476_v1   ;;  %v1443_v15 = vld [vmem:[#allocation5 + $0x18] sm:$0xff]   ;;  %v1444_v17 = vld [vmem:[#allocation5 + $0x20] sm:$0xff]   ;;  %v1445_v20 = vld [vmem:[#allocation5 + $0x28] sm:$0xff]   ;;  %v479_v25 = vand.u32 127, %v478_v24  ;;  %v801_v35 = vshrl.u32 %v478_v24, 7  ;;  %vm898_vm15 = vcmask 7168  }
  0xb2   : > { %1225 = vmatprep.subr.bf16.mxu0 %v1706_v6  ;;  %1241 = vmatprep.mubr.msk.bf16.mxu0 %vm1707_vm1, %v1706_v6  ;;  %v1436_v19 = vld [vmem:[%s2000_s1] sm:$0xff]   ;;  %v1438_v22 = vld [vmem:[#allocation2 + $0x8] sm:$0xff]   ;;  %v1439_v23 = vld [vmem:[#allocation2 + $0x10] sm:$0xff]   ;;  %s2319_s4 = sld [smem:[#allocation20_spill]]  ;;  %s928_s19 = sshll.u32 %s2033_s14, 4  ;;  %s2122_s19 = int_to_ptr.vmem [resolvable:$true] %s928_s19 }
  0xb3   : > { %1255 = vmatprep.subr.bf16.mxu1 %v1706_v6  ;;  %1271 = vmatprep.mubr.msk.bf16.mxu1 %vm1707_vm1, %v1706_v6  ;;  %v1437_v21 = vld [vmem:[#allocation2] sm:$0xff]   ;;  %v1446_v33 = vld [vmem:[#allocation5 + $0x30] sm:$0xff]   ;;  %v1447_v34 = vld [vmem:[#allocation5 + $0x38] sm:$0xff]   ;;  %v802_v37 = vadd.s32 8, %v801_v35  ;;  %v803_v38 = vadd.s32 16, %v801_v35  ;;  %s2320_s22 = sld [smem:[#allocation33_spill]] }
  0xb4   : > { %1256 = vmatpush3.bf16.msra.mxu1 %v1440_v10  ;;  %v1184_v36 = vld [vmem:[%s453_s26] ss:$0 sm:$0xff]  ;;  %v884_v59 = vld [vmem:[%s2031_s5 + $0x8] sm:$0xff]  ;;  %v885_v61 = vld [vmem:[%s2031_s5 + $0x10] sm:$0xff]  ;;  %s1199_s26 = sshll.u32 %s2013_s18, 8  ;;  %s903_s23 = scalar_lea.sflag [#allocation4], %s1997_s0 }
  0xb5   : > { %s2317_s16 = smov %s2316_s11  ;;  %v1428_v2 = vld [vmem:[%s2316_s11] sm:$0xff]   ;;  %492 = vperm.xlu1 %1426, %v477_v5   ;;  %484 = vperm.xlu0 %1425, %v477_v5   ;;  %vm808_vm9 = vcmp.eq.s32.totalorder %v801_v35, %v1184_v36  ;;  %vm809_vm10 = vcmp.eq.s32.totalorder %v802_v37, %v1184_v36  ;;  %vm810_vm11 = vcmp.eq.s32.totalorder %v803_v38, %v1184_v36  ;;  %s1708_s18 = smov [#allocation8]  }
  0xb6   : > { %1226 = vmatpush3.bf16.msra.mxu0 %v1428_v2  ;;  %v1429_v7 = vld [vmem:[%s2317_s16 + $0x8] sm:$0xff]   ;;  %v1430_v8 = vld [vmem:[%s2317_s16 + $0x10] sm:$0xff]   ;;  %v1431_v9 = vld [vmem:[%s2317_s16 + $0x18] sm:$0xff]   ;;  %1257 = vmatprep.subr.bf16.mxu1 %v1706_v6  ;;  %v1185_v39 = vsel %vm808_vm9, 1.0, %v1706_v6  ;;  %v1186_v40 = vsel %vm809_vm10, 1.0, %v1706_v6  ;;  %v1187_v44 = vsel %vm810_vm11, 1.0, %v1706_v6 }
  0xb7   : > { %1227 = vmatprep.subr.bf16.mxu0 %v1706_v6  ;;  %v1432_v12 = vld [vmem:[%s2317_s16 + $0x20] sm:$0xff]   ;;  %v1433_v14 = vld [vmem:[%s2317_s16 + $0x28] sm:$0xff]   ;;  %v1434_v16 = vld [vmem:[%s2317_s16 + $0x30] sm:$0xff]   ;;  %v820_v41 = vpack.c.bf16 %v1186_v40, %v1185_v39  ;;  %v886_v42 = vsel %vm822_vm12, %v1185_v39, 0.0  ;;  %v889_v43 = vsel %vm822_vm12, %v1186_v40, 0.0  ;;  %v892_v45 = vsel %vm822_vm12, %v1187_v44, 0.0 }
  0xb8   : > { %1258 = vmatpush3.bf16.msra.mxu1 %v1441_v11  ;;  %v1435_v18 = vld [vmem:[%s2317_s16 + $0x38] sm:$0xff]   ;;  %v821_v55 = vpack.c.bf16 %v1187_v44, %v1187_v44  ;;  %v883_v56 = vld [vmem:[%s2031_s5] sm:$0xff]  ;;  %p2321_p8 = scmp.ne.s32.totalorder %s2319_s4, 0  ;;  %s1538_s13 = sshll.u32 %s1708_s18, 4  ;;  %s1539_s13 = int_to_ptr.vmem [resolvable:$false] %s1538_s13 }
  0xb9   : > { %1427 = vset.pattern.permute.xlu0 %v1704_v3  ;;  %1259 = vmatprep.subr.bf16.mxu1 %v1706_v6  ;;  %s2120_s20 = scalar_lea.hbm %s2320_s22, %s1199_s26  ;;  %s1540_s24 = scalar_lea.vmem %s1539_s13, 512 }
  0xba   : > { %1228 = vmatpush3.bf16.msra.mxu0 %v1429_v7  ;;  %p1541_p1 = scmp.lt.s32.totalorder %s2122_s19, %s1539_s13 }
  0xbb   : > { %1229 = vmatprep.subr.bf16.mxu0 %v1706_v6 }
  0xbc   : > { %1260 = vmatpush3.bf16.msra.mxu1 %v1442_v13 }
  0xbd   : > { %1261 = vmatprep.subr.bf16.mxu1 %v1706_v6 }
  0xbe   : > { %1230 = vmatpush3.bf16.msra.mxu0 %v1430_v8 }
  0xbf   : > { %1231 = vmatprep.subr.bf16.mxu0 %v1706_v6 }
  0xc0   : > { %1262 = vmatpush3.bf16.msra.mxu1 %v1443_v15 }
  0xc1   : > { %1263 = vmatprep.subr.bf16.mxu1 %v1706_v6 }
  0xc2   : > { %1232 = vmatpush3.bf16.msra.mxu0 %v1431_v9 }
  0xc3   : > { %1233 = vmatprep.subr.bf16.mxu0 %v1706_v6 }
  0xc4   : > { %1264 = vmatpush3.bf16.msra.mxu1 %v1444_v17 }
  0xc5   : > { %1265 = vmatprep.subr.bf16.mxu1 %v1706_v6 }
  0xc6   : > { %1234 = vmatpush3.bf16.msra.mxu0 %v1432_v12 }
  0xc7   : > { %1235 = vmatprep.subr.bf16.mxu0 %v1706_v6 }
  0xc8   : > { %1266 = vmatpush3.bf16.msra.mxu1 %v1445_v20 }
  0xc9   : > { %1267 = vmatprep.subr.bf16.mxu1 %v1706_v6 }
  0xca   : > { %1236 = vmatpush3.bf16.msra.mxu0 %v1433_v14 }
  0xcb   : > { %1237 = vmatprep.subr.bf16.mxu0 %v1706_v6 }
  0xcc   : > { %1268 = vmatpush3.bf16.msra.mxu1 %v1446_v33 }
  0xcd   : > { %1269 = vmatprep.subr.bf16.mxu1 %v1706_v6 }
  0xce   : > { %1238 = vmatpush3.bf16.msra.mxu0 %v1434_v16 }
  0xcf   : > { %1239 = vmatprep.subr.bf16.mxu0 %v1706_v6 }
  0xd0   : > { %1270 = vmatpush3.bf16.msra.mxu1 %v1447_v34 }
  0xd2   : > { %1240 = vmatpush3.bf16.msra.mxu0 %v1435_v18 }
  0xd3   : > { %1245 = vmatprep.subr.bf16.mxu0 %v1706_v6 }
  0xd4   : > { %887 = vadd.xlane.f32.xlu0 %v886_v42 }
  0xd5   : > { %1242 = vmatmul.mubr.bf16.vlgmr.msra.gmra.mrb[0].mxu0 %v1436_v19 }
  0xd6   : > { %1246 = vmatpush3.bf16.msra.mxu0 %v1437_v21  ;;  %1251 = vmatprep.mubr.msk.bf16.mxu0 %vm1707_vm1, %v1706_v6 }
  0xd7   : > { %1247 = vmatprep.subr.bf16.mxu0 %v1706_v6 }
  0xd8   : > { %893 = vadd.xlane.f32.xlu0 %v892_v45 }
  0xd9   : > { %890 = vadd.xlane.f32.xlu1 %v889_v43 }
  0xda   : > { %1248 = vmatpush3.bf16.msra.mxu0 %v1438_v22 }
  0xdb   : > { %1249 = vmatprep.subr.bf16.mxu0 %v1706_v6 }
  0xde   : > { %1250 = vmatpush3.bf16.msra.mxu0 %v1439_v23 }
 0x130   : > { %v490_v26 = vpop.permute.xlu1 %489  ;;  %v482_v27 = vpop.permute.xlu0 %481 }
 0x131   : > { %vm494_vm2 = vcmp.eq.s32.totalorder %v479_v25, %v490_v26  ;;  %vm486_vm3 = vcmp.eq.s32.totalorder %v479_v25, %v482_v27 }
 0x132   : > { %vm496_vm4 = vmor %vm486_vm3, %vm494_vm2 }
 0x133   : > { %v1161_v30 = vsel %vm496_vm4, 1.0, %v1706_v6 }
 0x134   : > { %v493_v28 = vpop.permute.xlu1 %492  ;;  %v485_v29 = vpop.permute.xlu0 %484 }
 0x135   : > { %vm495_vm5 = vcmp.eq.s32.totalorder %v479_v25, %v493_v28  ;;  %vm487_vm6 = vcmp.eq.s32.totalorder %v479_v25, %v485_v29 }
 0x136   : > { %vm497_vm7 = vmor %vm487_vm6, %vm495_vm5 }
 0x137   : > { %v1162_v31 = vsel %vm497_vm7, 1.0, %v1706_v6 }
 0x138   : > { %v502_v32 = vpack.c.bf16 %v1162_v31, %v1161_v30 }
 0x13a   : > { %1252 = vmatmul.mubr.msk.bf16.vlgmr.msra.gmra.mrb[0].mxu0 %vm640_vm8, %v502_v32 }
 0x161   : > { %v888_v57 = vpop.xlane.xlu0 %887 }
 0x162   : > { %v895_v58 = vadd.f32 %v888_v57, %v883_v56 }
 0x164   : > { %899 = vst.msk [vmem:[%s2031_s5] sm:$0xff] %vm898_vm15, %v895_v58 }
 0x165   : > { %v894_v62 = vpop.xlane.xlu0 %893 }
 0x166   : > { %v891_v60 = vpop.xlane.xlu1 %890  ;;  %v897_v0 = vadd.f32 %v894_v62, %v885_v61 }
 0x167   : > { %v896_v63 = vadd.f32 %v891_v60, %v884_v59 }
 0x168   : > { %901 = vst.msk [vmem:[%s2031_s5 + $0x10] sm:$0xff] %vm898_vm15, %v897_v0 }
 0x169   : > { %900 = vst.msk [vmem:[%s2031_s5 + $0x8] sm:$0xff] %vm898_vm15, %v896_v63  ;;  %s1534_s5 = scalar_lea.vmem %s2122_s19, 256 }
 0x16a   : > { %p1535_p6 = scmp.ne.s32.totalorder %s2122_s19, %s1534_s5  ;;  %p1542_p0 = scmp.lt.s32.totalorder %s1540_s24, %s1534_s5 }
 0x16c   : > { %p1536_p10 = pnand %p1535_p6, %p2321_p8  ;;  %p1543_p11 = por %p1542_p0, %p1541_p1 }
 0x16e   : > { %p1537_p12 = pneg %p1536_p10 }
 0x170   : > { %p1544_p4 = pnand %p1543_p11, %p1537_p12 }
 0x20d   : > { %v678_v46 = vpop.f32.mrb[0].mxu0 }
 0x20e   : > { %v687_v47 = vmul.f32 0.01, %v678_v46  ;;  %v1253_v48 = vpop.f32.mrb[1].mxu0  ;;  %vm685_vm13 = vcmp.ge.f32.partialorder %v678_v46, 0.0 }
 0x20f   : > { %v681_v49 = vpop.f32.mrb[2].mxu0 }
 0x210   : > { %vm686_vm14 = vcmp.ge.f32.partialorder %v681_v49, 0.0  ;;  %v688_v50 = vmul.f32 0.01, %v681_v49  ;;  %v1254_v51 = vpop.f32.mrb[3].mxu0  ;;  %v689_v52 = vsel %vm685_vm13, %v678_v46, %v687_v47 }
 0x212   : > { %v690_v53 = vsel %vm686_vm14, %v681_v49, %v688_v50 }
 0x213   : > { %v691_v54 = vpack.c.bf16 %v690_v53, %v689_v52 }
 0x215   : > { %1272 = vmatmul.mubr.bf16.vlgmr.msra.gmra.mrb[0].mxu1 %v691_v54  ;;  %1275 = vmatprep.subr.bf16.mxu1 %v691_v54 }
 0x216   : > { %1276 = vmatpush3.bf16.msra.mxu1 %v691_v54  ;;  %1277 = vmatprep.mubr.msk.bf16.mxu1 %vm822_vm12, %v820_v41 }
 0x21d   : > { %1278 = vmatmul.mubr.msk.bf16.vlgmr.msra.gmra.mrb[4].mxu1 %vm822_vm12, %v821_v55 }
 0x2e8   : > { %v790_v1 = vpop.f32.mrb[0].mxu1 }
 0x2e9   : > { %797 = vst [vmem:[%s2033_s14] sm:$0xff] %v790_v1  ;;  %v1273_v2 = vpop.f32.mrb[1].mxu1 }
 0x2ea   : > { %v793_v3 = vpop.f32.mrb[2].mxu1 }
 0x2eb   : > { %798 = vst [vmem:[%s2033_s14 + $0x8] sm:$0xff] %v793_v3  ;;  %v1274_v4 = vpop.f32.mrb[3].mxu1 }
 0x2ec   : > { %1547 = shalt.err (!%p1544_p4)
}
 0x2ed   : > { %s1548_s14 = scalar_lea.hbm %s2120_s20, 256  ;;  %s1552_s21 = scalar_lea.hbm %s2320_s22, 1024 }
 0x2ee   : > { %p1549_p2 = scmp.ne.s32.totalorder %s2120_s20, %s1548_s14  ;;  %p1553_p9 = scmp.lt.u32.totalorder %s2120_s20, %s2320_s22 }
 0x2ef   : > { %p1554_p3 = scmp.lt.u32.totalorder %s1552_s21, %s1548_s14  ;;  %p1556_p6 = scmp.lt.u32.totalorder %s1548_s14, %s2120_s20 }
 0x2f0   : > { %p1550_p7 = pnand %p1549_p2, %p2321_p8 }
 0x2f1   : > { %p1555_p5 = por %p1554_p3, %p1553_p9 }
 0x2f2   : > { %p1551_p13 = pneg %p1550_p7 }
 0x2f3   : > { %p1557_p10 = por %p1556_p6, %p1555_p5 }
 0x2f5   : > { %p1558_p12 = pnand %p1557_p10, %p1551_p13 }
 0x2f7   : > { %1561 = shalt.err (!%p1558_p12)
}
 0x2f8   : > { %s1709_s1 = smov 128   ;;  %s1710_s11 = smov 8   ;;  %v813_v5 = vld [vmem:[%s2035_s6 + $0x10] sm:$0xff]  ;;  %v811_v6 = vld [vmem:[%s2035_s6] sm:$0xff]  ;;  %v1279_v7 = vpop.f32.mrb[4].mxu1  ;;  %v812_v10 = vld [vmem:[%s2035_s6 + $0x8] sm:$0xff] }
 0x2f9   : > { %1298 = dma.vmem_to_hbm [thread:$0]  (%p2321_p8), %s2122_s19, 256, %s2120_s20, %s903_s23, %s1709_s1, %s1709_s1, %s1710_s11   ;;  %v879_v8 = vadd.f32 %v1279_v7, %v813_v5  ;;  %v863_v9 = vpop.f32.mrb[5].mxu1 }
 0x2fa   : > { %s1287_s27 = smul.u32 384, %s1684_s12  ;;  %s2322_s26 = sld [smem:[#allocation22_spill]]  ;;  %v877_v11 = vadd.f32 %v863_v9, %v811_v6  ;;  %v1280_v12 = vpop.f32.mrb[6].mxu1 }
 0x2fb   : > { %s944_s7 = sshll.u32 %s2035_s6, 4  ;;  %882 = vst [vmem:[%s2035_s6 + $0x10] sm:$0xff] %v879_v8  ;;  %v866_v13 = vpop.f32.mrb[7].mxu1  ;;  %s2323_s19 = sld [smem:[#allocation34_spill]]  ;;  %s2165_s7 = int_to_ptr.vmem [resolvable:$true] %s944_s7 }
 0x2fc   : > { %880 = vst [vmem:[%s2035_s6] sm:$0xff] %v877_v11  ;;  %v878_v14 = vadd.f32 %v866_v13, %v812_v10  ;;  %s2324_s12 = sand.u32 1, %s1660_s28   ;;  %s1562_s23 = scalar_lea.vmem %s2165_s7, 384 }
 0x2fd   : > { %s2170_s20 = scalar_lea.sflag [#allocation10], %s2324_s12  ;;  %p1563_p8 = scmp.ne.s32.totalorder %s2165_s7, %s1562_s23 }
 0x2fe   : > { %881 = vst [vmem:[%s2035_s6 + $0x8] sm:$0xff] %v878_v14  ;;  %s1711_s5 = smov [#allocation9]  }
 0x2ff   : > { %s1566_s18 = sshll.u32 %s1711_s5, 4  ;;  %s1567_s18 = int_to_ptr.vmem [resolvable:$false] %s1566_s18 }
 0x300   : > { %p2325_p1 = scmp.ne.s32.totalorder %s2322_s26, 0  ;;  %s1568_s13 = scalar_lea.vmem %s1567_s18, 768 }
 0x301   : > { %s2163_s30 = scalar_lea.hbm %s2323_s19, %s1287_s27  ;;  %p1569_p4 = scmp.lt.s32.totalorder %s2165_s7, %s1567_s18 }
 0x302   : > { %p1564_p0 = pnand %p1563_p8, %p2325_p1  ;;  %p1570_p2 = scmp.lt.s32.totalorder %s1568_s13, %s1562_s23 }
 0x304   : > { %p1565_p11 = pneg %p1564_p0  ;;  %p1571_p7 = por %p1570_p2, %p1569_p4 }
 0x306   : > { %p1572_p13 = pnand %p1571_p7, %p1565_p11 }
 0x308   : > { %1575 = shalt.err (!%p1572_p13)
}
 0x309   : > { %s1576_s6 = scalar_lea.hbm %s2163_s30, 384  ;;  %s1580_s2 = scalar_lea.hbm %s2323_s19, 768 }
 0x30a   : > { %p1577_p9 = scmp.ne.s32.totalorder %s2163_s30, %s1576_s6  ;;  %p1581_p6 = scmp.lt.u32.totalorder %s2163_s30, %s2323_s19 }
 0x30b   : > { %p1582_p10 = scmp.lt.u32.totalorder %s1580_s2, %s1576_s6  ;;  %p1584_p8 = scmp.lt.u32.totalorder %s1576_s6, %s2163_s30 }
 0x30c   : > { %p1578_p3 = pnand %p1577_p9, %p2325_p1 }
 0x30d   : > { %p1583_p12 = por %p1582_p10, %p1581_p6 }
 0x30e   : > { %p1579_p5 = pneg %p1578_p3 }
 0x30f   : > { %p1585_p0 = por %p1584_p8, %p1583_p12 }
 0x311   : > { %p1586_p11 = pnand %p1585_p0, %p1579_p5 }
 0x313   : > { %1589 = shalt.err (!%p1586_p11)
}
 0x314   : > { %1299 = dma.vmem_to_hbm [thread:$0]  (%p2325_p1), %s2165_s7, 384, %s2163_s30, %s2170_s20, %s1709_s1, %s1709_s1, %s1710_s11  }
 0x315 PF: > { %s2326_s3 = sld [smem:[#allocation17_spill]]  ;;  %s2327_s8 = sld [smem:[#allocation21_spill]] }
 0x316   : > { %p1325_p4 = scmp.ge.s32.totalorder %s1696_s15, 2 }
 0x31b   : > { %s962_s27 = sand.u32 1, %s2326_s3   ;;  %p2328_p2 = scmp.ne.s32.totalorder %s2327_s8, 0 }
 0x31c   : > { %s963_s4 = scalar_lea.sflag [#allocation4], %s962_s27 }
 0x31d   : > { %p1314_p7 = pnand %p1325_p4, %p2328_p2 }
 0x31f   : > { %1647 = dma.done.wait (!%p1314_p7), %s963_s4, 256  }
 0x320   : > { %1649 = vsyncadd (!%p1314_p7), %s963_s4, 4294967040  ;;  %s2329_s0 = sld [smem:[#allocation16_spill]]  ;;  %s2330_s26 = sld [smem:[#allocation23_spill]] }
 0x326   : > { %s971_s12 = sand.u32 1, %s2329_s0   ;;  %p2331_p13 = scmp.ne.s32.totalorder %s2330_s26, 0 }
 0x327   : > { %s972_s23 = scalar_lea.sflag [#allocation10], %s971_s12 }
 0x328   : > { %p1317_p9 = pnand %p1325_p4, %p2331_p13 }
 0x32a   : > { %1651 = dma.done.wait (!%p1317_p9), %s972_s23, 384  }
 0x32b   : > { %1653 = vsyncadd (!%p1317_p9), %s972_s23, 4294966912  ;;  %s27_s15 = sadd.s32 1, %s1696_s15   ;;  %s2332_s1 = sld [smem:[#allocation26_spill]] }
 0x32c   : > { %p24_p1 = scmp.ge.s32.totalorder %s27_s15, 6   ;;  %s2333_s11 = sld [smem:[#allocation18_spill]] }
 0x32d   : > { %s2334_s12 = sld [smem:[#allocation19_spill]]  ;;  %s2335_s13 = sld [smem:[#allocation24_spill]] }
 0x32e   : > { %s2336_s14 = sld [smem:[#allocation25_spill]]  ;;  %s2337_s27 = smov %s1660_s28 }
 0x32f   : > { %s2338_s28 = smov %s1664_s29  ;;  %s2339_s29 = smov %s1949_s17 }
 0x330   : > { %s2340_s30 = smov %s1672_s9  ;;  %s2341_s9 = smov %s1676_s10 }
 0x331   : > { %s2342_s10 = smov %s2332_s1  ;;  %26 = sbr.rel (!%p24_p1) target bundleno = 21 (0x15), region = 135 }
 0x338   :  { %985 = vsyncpa [#allocation3], 1 }
 0x339   :  { %987 = vsyncpa [#allocation3 + $0x1], 1 }
 0x33a   :  { %988 = vsyncpa [#allocation6], 1 }
 0x33b   :  { %989 = vsyncpa [#allocation4], 1 }
 0x33c   :  { %991 = vsyncpa [#allocation4 + $0x1], 1 }
 0x33d   :  { %992 = vsyncpa [#allocation10], 1 }
 0x33e   :  { %994 = vsyncpa [#allocation10 + $0x1], 1 }

</bundles_post_ra>
